<compile_context>
chip_gen: v5e
topology: v5e:2x2
jax: 0.10.0
libtpu: 0.0.40
codegen_flags: <defaults>
</compile_context>

<pallas_src>
import functools

import numpy as np
import jax
import jax.numpy as jnp
from jax.experimental import pallas as pl
from jax.experimental.pallas import tpu as pltpu


_POS_W = 8  # lanes holding [x, y, z, 0, 0, 0, 0, 0]


# ----------------------------------------------------------------------------
# Pallas kernel: fused spatial-softmax + expected-coordinate reduction
# ----------------------------------------------------------------------------

def _spatial_softmax3d_kernel(f_ref, pos_ref, o_ref, *, inv_temp):
    # f_ref:   (tm, L)      feature rows, native dtype
    # pos_ref: (L, 8)       [pos_x | pos_y | pos_z | zeros]  (f32)
    # o_ref:   (tm, 8)      expected coords in lanes 0..2, zeros elsewhere
    s = f_ref[...].astype(jnp.float32) * inv_temp              # temperature = 0.01
    m = jnp.max(s, axis=-1, keepdims=True)                     # row max   (XLU)
    e = jnp.exp(s - m)                                         # exp       (EUP)
    denom = jnp.sum(e, axis=-1, keepdims=True)                 # row sum   (XLU)
    inv = pl.reciprocal(denom, approx=True)                    # 1/sum     (EUP)
    # sum_j p_j * pos_j == (e @ pos) * (1/denom)  -> MXU, f32 accumulate
    ex = jnp.dot(e, pos_ref[...], preferred_element_type=jnp.float32)
    o_ref[...] = (ex * inv).astype(o_ref.dtype)


# ----------------------------------------------------------------------------
# Wrappers
# ----------------------------------------------------------------------------

def _round_up(x, m):
    return ((x + m - 1) // m) * m


def _choose_tm(R, L, feat_itemsize):
    """Pick the row-tile size: as large as possible within a VMEM budget,
    but with >= 2 grid steps when R allows (v7x dual-TensorCore sharding)."""
    if R <= 8:
        return R                                   # block == full extent
    budget = 24 * 1024 * 1024                      # double-buffered feature block
    tm = 512
    while tm > 8 and 2 * tm * L * feat_itemsize > budget:
        tm //= 2
    tm = min(tm, _round_up(R, 8))
    if pl.cdiv(R, tm) < 2:                         # ensure >= 2 row tiles
        tm = max(8, _round_up(pl.cdiv(R, 2), 8))
    return tm


def make_pos_buffer(depth, height, width):
    """Replicates the module's registered pos_x/pos_y/pos_z buffers (same
    np.meshgrid call, same flatten order as the PyTorch code) packed as an
    (L, 8) f32 matrix: columns 0,1,2 = x,y,z; rest zeros.  Built once,
    outside the jitted forward."""
    pos_x, pos_y, pos_z = np.meshgrid(np.linspace(-1.0, 1.0, depth),
                                      np.linspace(-1.0, 1.0, height),
                                      np.linspace(-1.0, 1.0, width))
    L = depth * height * width
    pos = np.zeros((L, _POS_W), np.float32)
    pos[:, 0] = pos_x.reshape(L)
    pos[:, 1] = pos_y.reshape(L)
    pos[:, 2] = pos_z.reshape(L)
    return jnp.asarray(pos)


def spatial_softmax3d(feature, pos, *, depth, height, width, channel,
                      temperature=0.01):
    """feature: (..., C, D, H, W) (any leading batch dims) -> (B, channel*3)."""
    L = depth * height * width
    f2 = feature.reshape(-1, L)                    # == .view(-1, H*W*D), native dtype
    R = f2.shape[0]                                # B * channel rows

    itemsize = f2.dtype.itemsize
    tm = _choose_tm(R, L, itemsize)
    grid = (pl.cdiv(R, tm),)

    # VMEM: feature block + pos + out, all double-buffered by the pipeline.
    vmem_need = 2 * tm * L * itemsize + 2 * (L + tm) * _POS_W * 4
    vmem_limit = int(min(max(vmem_need + (4 << 20), 32 << 20), 64 << 20))

    cost = pl.CostEstimate(
        flops=2 * R * L * _POS_W + 5 * R * L,
        transcendentals=R * L,
        bytes_accessed=R * L * itemsize + L * _POS_W * 4 + R * _POS_W * 4,
    )

    out = pl.pallas_call(
        functools.partial(_spatial_softmax3d_kernel, inv_temp=1.0 / temperature),
        out_shape=jax.ShapeDtypeStruct((R, _POS_W), jnp.float32),
        grid_spec=pltpu.PrefetchScalarGridSpec(
            num_scalar_prefetch=0,
            grid=grid,
            in_specs=[pl.BlockSpec((tm, L), lambda i: (i, 0)),
                      pl.BlockSpec((L, _POS_W), lambda i: (0, 0))],
            out_specs=pl.BlockSpec((tm, _POS_W), lambda i: (i, 0))),
        compiler_params=pltpu.CompilerParams(
            dimension_semantics=("parallel",),
            vmem_limit_bytes=vmem_limit),
        cost_estimate=cost,
    )(f2, pos)

    keypoints = out[:, :3]                         # (B*C, 3): x, y, z
    return keypoints.reshape(-1, channel * 3)      # .view(-1, channel*3)


# ----------------------------------------------------------------------------
# Pure-JAX reference (mirrors the PyTorch forward) for a correctness check
# ----------------------------------------------------------------------------

def spatial_softmax3d_ref(feature, pos, *, depth, height, width, channel,
                          temperature=0.01):
    L = depth * height * width
    f2 = feature.astype(jnp.float32).reshape(-1, L)
    p = jax.nn.softmax(f2 / temperature, axis=-1)
    exp_xyz = p @ pos[:, :3]
    return exp_xyz.reshape(-1, channel * 3)


# ----------------------------------------------------------------------------
# main
# ----------------------------------------------------------------------------

if __name__ == "__main__":
    B = 2
    channel = 4
    depth, height, width = 8, 16, 16               # L = 2048

    key = jax.random.PRNGKey(0)
    feature = jax.random.normal(key, (B, channel, depth, height, width),
                                jnp.float32)

    pos = make_pos_buffer(depth, height, width)

    fwd = jax.jit(functools.partial(spatial_softmax3d,
                                    depth=depth, height=height, width=width,
                                    channel=channel))
    out = fwd(feature, pos)
    out = jax.block_until_ready(out)

    assert out.shape == (B, channel * 3), out.shape
    assert bool(jnp.all(jnp.isfinite(out)))

    ref = spatial_softmax3d_ref(feature, pos, depth=depth, height=height,
                                width=width, channel=channel)
    assert bool(jnp.allclose(out, ref, atol=1e-2, rtol=1e-2)), \
        float(jnp.max(jnp.abs(out - ref)))

    print("KERNEL_OK")
</pallas_src>

<mosaic_0001>
module attributes {stable_mosaic.version = 11 : i64} {
  func.func @_spatial_softmax3d_kernel(%arg0: i32, %arg1: memref<8x2048xf32, #tpu.memory_space<vmem>>, %arg2: memref<2048x8xf32, #tpu.memory_space<vmem>>, %arg3: memref<8x8xf32, #tpu.memory_space<vmem>>) attributes {dimension_semantics = [#tpu.dimension_semantics<parallel>], iteration_bounds = array<i64: 1>, scalar_prefetch = 0 : i64, scratch_operands = 0 : i64, tpu.core_type = #tpu.core_type<tc>, window_params = [{transform_indices = @transform_0, window_bounds = array<i64: 8, 2048>}, {pipeline_mode = #tpu.pipeline_mode<synchronous>, transform_indices = @transform_1, window_bounds = array<i64: 2048, 8>}, {transform_indices = @transform_2, window_bounds = array<i64: 8, 8>}]} {
    %c0 = arith.constant 0 : index
    %c0_0 = arith.constant 0 : index
    %0 = vector.load %arg1[%c0, %c0_0] : memref<8x2048xf32, #tpu.memory_space<vmem>>, vector<8x2048xf32>
    %cst = arith.constant 1.000000e+02 : f32
    %1 = vector.broadcast %cst : f32 to vector<8x2048xf32>
    %2 = arith.mulf %0, %1 : vector<8x2048xf32>
    %cst_1 = arith.constant dense<0xFF800000> : vector<8xf32>
    %3 = vector.multi_reduction <maximumf>, %2, %cst_1 [1] : vector<8x2048xf32> to vector<8xf32>
    %4 = vector.shape_cast %3 : vector<8xf32> to vector<8x1xf32>
    %5 = vector.broadcast %4 : vector<8x1xf32> to vector<8x2048xf32>
    %6 = arith.subf %2, %5 : vector<8x2048xf32>
    %7 = math.exp %6 : vector<8x2048xf32>
    %cst_2 = arith.constant dense<0.000000e+00> : vector<8xf32>
    %8 = vector.multi_reduction <add>, %7, %cst_2 [1] : vector<8x2048xf32> to vector<8xf32>
    %9 = vector.shape_cast %8 : vector<8xf32> to vector<8x1xf32>
    %10 = tpu.reciprocal %9 {approx = true} : vector<8x1xf32> -> vector<8x1xf32>
    %c0_3 = arith.constant 0 : index
    %c0_4 = arith.constant 0 : index
    %11 = vector.load %arg2[%c0_3, %c0_4] : memref<2048x8xf32, #tpu.memory_space<vmem>>, vector<2048x8xf32>
    %cst_5 = arith.constant dense<0.000000e+00> : vector<8x8xf32>
    %12 = tpu.matmul %7, %11, %cst_5 {dimension_numbers = #tpu.dot_dimension_numbers<[1], [0], [0], [1], [0, 0, 1, 1], [], []>} : vector<8x2048xf32>, vector<2048x8xf32>, vector<8x8xf32> -> vector<8x8xf32>
    %13 = vector.broadcast %10 : vector<8x1xf32> to vector<8x8xf32>
    %14 = arith.mulf %12, %13 : vector<8x8xf32>
    %c0_6 = arith.constant 0 : index
    %c0_7 = arith.constant 0 : index
    %15 = vector.load %arg3[%c0_6, %c0_7] : memref<8x8xf32, #tpu.memory_space<vmem>>, vector<8x8xf32>
    tpu.vector_store %arg3[%c0_6, %c0_7], %14 {strides = array<i32>} : memref<8x8xf32, #tpu.memory_space<vmem>>, vector<8x8xf32>,
    return
  }
  func.func @transform_0(%arg0: i32) -> (i32, i32) {
    %c0_i32 = arith.constant 0 : i32
    %c0_i32_0 = arith.constant 0 : i32
    return %arg0, %c0_i32 : i32, i32
  }
  func.func @transform_1(%arg0: i32) -> (i32, i32) {
    %c0_i32 = arith.constant 0 : i32
    %c0_i32_0 = arith.constant 0 : i32
    %c0_i32_1 = arith.constant 0 : i32
    return %c0_i32, %c0_i32_0 : i32, i32
  }
  func.func @transform_2(%arg0: i32) -> (i32, i32) {
    %c0_i32 = arith.constant 0 : i32
    %c0_i32_0 = arith.constant 0 : i32
    return %arg0, %c0_i32 : i32, i32
  }
}

</mosaic_0001>

<bundles_post_ra>
// kernel: spatial_softmax3d.1
= control target key start
LH: loop header
LB: loop body
LE: loop exit
PB: predicated region body
PF: predicated region fallthrough
CT: control target
= control target key end

     0   :  { %vm703_vm0 = vcmask 64512   ;;  %s1691_s0 = inlined_call_operand.vmem [shape: f32[8,2048], index: 0, kind: input, shape index: {}]   ;;  %s1692_s1 = inlined_call_operand.vmem [shape: f32[2048,8], index: 1, kind: input, shape index: {}]   ;;  %s1693_s2 = inlined_call_operand.vmem [shape: f32[8,8], index: 2, kind: output, shape index: {}]  }
   0x1   :  { %v11_v0 = vld [vmem:[%s1691_s0] sm:$0xff]  ;;  %v12_v1 = vld [vmem:[%s1691_s0 + $0x8] sm:$0xff]  ;;  %v13_v2 = vld [vmem:[%s1691_s0 + $0x10] sm:$0xff] }
   0x2   :  { %v14_v3 = vld [vmem:[%s1691_s0 + $0x18] sm:$0xff]  ;;  %v15_v4 = vld [vmem:[%s1691_s0 + $0x20] sm:$0xff]  ;;  %v16_v5 = vld [vmem:[%s1691_s0 + $0x28] sm:$0xff]  ;;  %v776_v6 = vmul.f32 100.0, %v11_v0  ;;  %v778_v7 = vmul.f32 100.0, %v12_v1  ;;  %v780_v8 = vmul.f32 100.0, %v13_v2 }
   0x3   :  { %v17_v9 = vld [vmem:[%s1691_s0 + $0x30] sm:$0xff]  ;;  %v18_v10 = vld [vmem:[%s1691_s0 + $0x38] sm:$0xff]  ;;  %v19_v11 = vld [vmem:[%s1691_s0 + $0x40] sm:$0xff]  ;;  %v791_v12 = vmul.f32 100.0, %v14_v3  ;;  %v793_v13 = vmul.f32 100.0, %v15_v4  ;;  %v795_v14 = vmul.f32 100.0, %v16_v5 }
   0x4   :  { %v20_v15 = vld [vmem:[%s1691_s0 + $0x48] sm:$0xff]  ;;  %v21_v16 = vld [vmem:[%s1691_s0 + $0x50] sm:$0xff]  ;;  %v22_v17 = vld [vmem:[%s1691_s0 + $0x58] sm:$0xff]  ;;  %v806_v18 = vmul.f32 100.0, %v17_v9  ;;  %v808_v19 = vmul.f32 100.0, %v18_v10  ;;  %v810_v20 = vmul.f32 100.0, %v19_v11 }
   0x5   :  { %v23_v21 = vld [vmem:[%s1691_s0 + $0x60] sm:$0xff]  ;;  %v24_v22 = vld [vmem:[%s1691_s0 + $0x68] sm:$0xff]  ;;  %v25_v23 = vld [vmem:[%s1691_s0 + $0x70] sm:$0xff]  ;;  %v821_v24 = vmul.f32 100.0, %v20_v15  ;;  %v823_v25 = vmul.f32 100.0, %v21_v16  ;;  %v825_v26 = vmul.f32 100.0, %v22_v17  ;;  %v43_v27 = vmax.f32 %v776_v6, %v793_v13 }
   0x6   :  { %v26_v28 = vld [vmem:[%s1691_s0 + $0x78] sm:$0xff]  ;;  %v832_v29 = vmul.f32 100.0, %v23_v21  ;;  %v834_v30 = vmul.f32 100.0, %v24_v22  ;;  %v836_v31 = vmul.f32 100.0, %v25_v23  ;;  %v44_v32 = vmax.f32 %v778_v7, %v795_v14  ;;  %v140_v41 = vld [vmem:[%s1692_s1 + $0x70] sm:$0xff]  ;;  %v139_v49 = vld [vmem:[%s1692_s1 + $0x68] sm:$0xff] }
   0x7   :  { %v141_v33 = vld [vmem:[%s1692_s1 + $0x78] sm:$0xff]  ;;  %v846_v35 = vmul.f32 100.0, %v26_v28  ;;  %v45_v36 = vmax.f32 %v780_v8, %v806_v18  ;;  %v46_v37 = vmax.f32 %v791_v12, %v808_v19  ;;  %v47_v38 = vmax.f32 %v43_v27, %v810_v20  ;;  %v156_v43 = vld [vmem:[%s1692_s1 + $0xf0] sm:$0xff]  ;;  %v155_v50 = vld [vmem:[%s1692_s1 + $0xe8] sm:$0xff] }
   0x8   :  { %v157_v34 = vld [vmem:[%s1692_s1 + $0xf8] sm:$0xff]  ;;  %382 = vmatpush.msra.mxu0 %v141_v33  ;;  %v48_v42 = vmax.f32 %v44_v32, %v821_v24  ;;  %v172_v44 = vld [vmem:[%s1692_s1 + $0x170] sm:$0xff]  ;;  %v171_v51 = vld [vmem:[%s1692_s1 + $0x168] sm:$0xff] }
   0x9   :  { %402 = vmatpush.msra.mxu1 %v157_v34  ;;  %v173_v39 = vld [vmem:[%s1692_s1 + $0x178] sm:$0xff]  ;;  %v188_v45 = vld [vmem:[%s1692_s1 + $0x1f0] sm:$0xff]  ;;  %v49_v46 = vmax.f32 %v45_v36, %v823_v25  ;;  %v50_v47 = vmax.f32 %v46_v37, %v825_v26  ;;  %v51_v48 = vmax.f32 %v47_v38, %v832_v29  ;;  %v187_v53 = vld [vmem:[%s1692_s1 + $0x1e8] sm:$0xff] }
   0xa   :  { %v189_v40 = vld [vmem:[%s1692_s1 + $0x1f8] sm:$0xff]  ;;  %422 = vmatpush.msra.mxu2 %v173_v39  ;;  %383 = vmatpush.msra.mxu0 %v140_v41  ;;  %v52_v52 = vmax.f32 %v48_v42, %v834_v30  ;;  %v138_v54 = vld [vmem:[%s1692_s1 + $0x60] sm:$0xff]  ;;  %v136_v2 = vld [vmem:[%s1692_s1 + $0x50] sm:$0xff] }
   0xb   :  { %442 = vmatpush.msra.mxu3 %v189_v40  ;;  %403 = vmatpush.msra.mxu1 %v156_v43  ;;  %v154_v55 = vld [vmem:[%s1692_s1 + $0xe0] sm:$0xff]  ;;  %v53_v56 = vmax.f32 %v49_v46, %v836_v31  ;;  %v54_v57 = vmax.f32 %v50_v47, %v846_v35  ;;  %v137_v61 = vld [vmem:[%s1692_s1 + $0x58] sm:$0xff]  ;;  %v152_v4 = vld [vmem:[%s1692_s1 + $0xd0] sm:$0xff] }
   0xc   :  { %423 = vmatpush.msra.mxu2 %v172_v44  ;;  %384 = vmatpush.msra.mxu0 %v139_v49  ;;  %v170_v58 = vld [vmem:[%s1692_s1 + $0x160] sm:$0xff]  ;;  %v55_v60 = vmax.f32 %v51_v48, %v52_v52  ;;  %v153_v62 = vld [vmem:[%s1692_s1 + $0xd8] sm:$0xff]  ;;  %v168_v5 = vld [vmem:[%s1692_s1 + $0x150] sm:$0xff] }
   0xd   :  { %443 = vmatpush.msra.mxu3 %v188_v45  ;;  %404 = vmatpush.msra.mxu1 %v155_v50  ;;  %v186_v59 = vld [vmem:[%s1692_s1 + $0x1e0] sm:$0xff]  ;;  %v56_v63 = vmax.f32 %v53_v56, %v54_v57  ;;  %v169_v0 = vld [vmem:[%s1692_s1 + $0x158] sm:$0xff]  ;;  %v184_v9 = vld [vmem:[%s1692_s1 + $0x1d0] sm:$0xff] }
   0xe   :  { %424 = vmatpush.msra.mxu2 %v171_v51  ;;  %385 = vmatpush.msra.mxu0 %v138_v54  ;;  %v185_v1 = vld [vmem:[%s1692_s1 + $0x1d8] sm:$0xff]  ;;  %v135_v10 = vld [vmem:[%s1692_s1 + $0x48] sm:$0xff]  ;;  %v134_v17 = vld [vmem:[%s1692_s1 + $0x40] sm:$0xff] }
   0xf   :  { %444 = vmatpush.msra.mxu3 %v187_v53  ;;  %405 = vmatpush.msra.mxu1 %v154_v55  ;;  %v57_v3 = vmax.f32 %v55_v60, %v56_v63  ;;  %v151_v11 = vld [vmem:[%s1692_s1 + $0xc8] sm:$0xff]  ;;  %v150_v21 = vld [vmem:[%s1692_s1 + $0xc0] sm:$0xff]  ;;  %v133_v27 = vld [vmem:[%s1692_s1 + $0x38] sm:$0xff] }
  0x10   :  { %425 = vmatpush.msra.mxu2 %v170_v58  ;;  %386 = vmatpush.msra.mxu0 %v137_v61  ;;  %v167_v15 = vld [vmem:[%s1692_s1 + $0x148] sm:$0xff]  ;;  %v166_v22 = vld [vmem:[%s1692_s1 + $0x140] sm:$0xff]  ;;  %v149_v28 = vld [vmem:[%s1692_s1 + $0xb8] sm:$0xff] }
  0x11   :  { %445 = vmatpush.msra.mxu3 %v186_v59  ;;  %406 = vmatpush.msra.mxu1 %v153_v62  ;;  %v183_v16 = vld [vmem:[%s1692_s1 + $0x1c8] sm:$0xff]  ;;  %v182_v23 = vld [vmem:[%s1692_s1 + $0x1c0] sm:$0xff]  ;;  %v165_v32 = vld [vmem:[%s1692_s1 + $0x138] sm:$0xff] }
  0x12   :  { %426 = vmatpush.msra.mxu2 %v169_v0  ;;  %58 = vmax.xlane.f32.xlu0 %v57_v3  ;;  %v181_v33 = vld [vmem:[%s1692_s1 + $0x1b8] sm:$0xff]  ;;  %v132_v34 = vld [vmem:[%s1692_s1 + $0x30] sm:$0xff]  ;;  %v131_v39 = vld [vmem:[%s1692_s1 + $0x28] sm:$0xff] }
  0x13   :  { %446 = vmatpush.msra.mxu3 %v185_v1  ;;  %387 = vmatpush.msra.mxu0 %v136_v2  ;;  %v148_v36 = vld [vmem:[%s1692_s1 + $0xb0] sm:$0xff]  ;;  %v147_v40 = vld [vmem:[%s1692_s1 + $0xa8] sm:$0xff]  ;;  %v130_v43 = vld [vmem:[%s1692_s1 + $0x20] sm:$0xff] }
  0x14   :  { %407 = vmatpush.msra.mxu1 %v152_v4  ;;  %427 = vmatpush.msra.mxu2 %v168_v5  ;;  %v164_v37 = vld [vmem:[%s1692_s1 + $0x130] sm:$0xff]  ;;  %v163_v41 = vld [vmem:[%s1692_s1 + $0x128] sm:$0xff]  ;;  %v146_v44 = vld [vmem:[%s1692_s1 + $0xa0] sm:$0xff] }
  0x15   :  { %447 = vmatpush.msra.mxu3 %v184_v9  ;;  %388 = vmatpush.msra.mxu0 %v135_v10  ;;  %v180_v38 = vld [vmem:[%s1692_s1 + $0x1b0] sm:$0xff]  ;;  %v179_v42 = vld [vmem:[%s1692_s1 + $0x1a8] sm:$0xff]  ;;  %v162_v45 = vld [vmem:[%s1692_s1 + $0x120] sm:$0xff] }
  0x16   :  { %408 = vmatpush.msra.mxu1 %v151_v11  ;;  %428 = vmatpush.msra.mxu2 %v167_v15  ;;  %v178_v46 = vld [vmem:[%s1692_s1 + $0x1a0] sm:$0xff]  ;;  %v129_v47 = vld [vmem:[%s1692_s1 + $0x18] sm:$0xff]  ;;  %v128_v51 = vld [vmem:[%s1692_s1 + $0x10] sm:$0xff] }
  0x17   :  { %448 = vmatpush.msra.mxu3 %v183_v16  ;;  %389 = vmatpush.msra.mxu0 %v134_v17  ;;  %v145_v48 = vld [vmem:[%s1692_s1 + $0x98] sm:$0xff]  ;;  %v144_v52 = vld [vmem:[%s1692_s1 + $0x90] sm:$0xff]  ;;  %v127_v55 = vld [vmem:[%s1692_s1 + $0x8] sm:$0xff] }
  0x18   :  { %409 = vmatpush.msra.mxu1 %v150_v21  ;;  %429 = vmatpush.msra.mxu2 %v166_v22  ;;  %v161_v49 = vld [vmem:[%s1692_s1 + $0x118] sm:$0xff]  ;;  %v160_v53 = vld [vmem:[%s1692_s1 + $0x110] sm:$0xff]  ;;  %v143_v56 = vld [vmem:[%s1692_s1 + $0x88] sm:$0xff] }
  0x19   :  { %449 = vmatpush.msra.mxu3 %v182_v23  ;;  %390 = vmatpush.msra.mxu0 %v133_v27  ;;  %v177_v50 = vld [vmem:[%s1692_s1 + $0x198] sm:$0xff]  ;;  %v176_v54 = vld [vmem:[%s1692_s1 + $0x190] sm:$0xff]  ;;  %v159_v57 = vld [vmem:[%s1692_s1 + $0x108] sm:$0xff] }
  0x1a   :  { %410 = vmatpush.msra.mxu1 %v149_v28  ;;  %430 = vmatpush.msra.mxu2 %v165_v32  ;;  %v175_v58 = vld [vmem:[%s1692_s1 + $0x188] sm:$0xff]  ;;  %v126_v59 = vld [vmem:[%s1692_s1] sm:$0xff]  ;;  %v205_v63 = vld [vmem:[%s1692_s1 + $0x278] sm:$0xff] }
  0x1b   :  { %450 = vmatpush.msra.mxu3 %v181_v33  ;;  %391 = vmatpush.msra.mxu0 %v132_v34  ;;  %v142_v60 = vld [vmem:[%s1692_s1 + $0x80] sm:$0xff]  ;;  %v221_v0 = vld [vmem:[%s1692_s1 + $0x2f8] sm:$0xff]  ;;  %v204_v3 = vld [vmem:[%s1692_s1 + $0x270] sm:$0xff] }
  0x1c   :  { %411 = vmatpush.msra.mxu1 %v148_v36  ;;  %431 = vmatpush.msra.mxu2 %v164_v37  ;;  %v158_v61 = vld [vmem:[%s1692_s1 + $0x100] sm:$0xff]  ;;  %v237_v1 = vld [vmem:[%s1692_s1 + $0x378] sm:$0xff]  ;;  %v220_v4 = vld [vmem:[%s1692_s1 + $0x2f0] sm:$0xff] }
  0x1d   :  { %451 = vmatpush.msra.mxu3 %v180_v38  ;;  %392 = vmatpush.msra.mxu0 %v131_v39  ;;  %v174_v62 = vld [vmem:[%s1692_s1 + $0x180] sm:$0xff]  ;;  %v253_v2 = vld [vmem:[%s1692_s1 + $0x3f8] sm:$0xff]  ;;  %v236_v5 = vld [vmem:[%s1692_s1 + $0x370] sm:$0xff] }
  0x1e   :  { %412 = vmatpush.msra.mxu1 %v147_v40  ;;  %432 = vmatpush.msra.mxu2 %v163_v41  ;;  %v252_v9 = vld [vmem:[%s1692_s1 + $0x3f0] sm:$0xff]  ;;  %v203_v10 = vld [vmem:[%s1692_s1 + $0x268] sm:$0xff]  ;;  %v202_v17 = vld [vmem:[%s1692_s1 + $0x260] sm:$0xff] }
  0x1f   :  { %452 = vmatpush.msra.mxu3 %v179_v42  ;;  %393 = vmatpush.msra.mxu0 %v130_v43  ;;  %v219_v11 = vld [vmem:[%s1692_s1 + $0x2e8] sm:$0xff]  ;;  %v218_v21 = vld [vmem:[%s1692_s1 + $0x2e0] sm:$0xff]  ;;  %v201_v27 = vld [vmem:[%s1692_s1 + $0x258] sm:$0xff] }
  0x20   :  { %413 = vmatpush.msra.mxu1 %v146_v44  ;;  %433 = vmatpush.msra.mxu2 %v162_v45  ;;  %v235_v15 = vld [vmem:[%s1692_s1 + $0x368] sm:$0xff]  ;;  %v234_v22 = vld [vmem:[%s1692_s1 + $0x360] sm:$0xff]  ;;  %v217_v28 = vld [vmem:[%s1692_s1 + $0x2d8] sm:$0xff] }
  0x21   :  { %453 = vmatpush.msra.mxu3 %v178_v46  ;;  %394 = vmatpush.msra.mxu0 %v129_v47  ;;  %v251_v16 = vld [vmem:[%s1692_s1 + $0x3e8] sm:$0xff]  ;;  %v250_v23 = vld [vmem:[%s1692_s1 + $0x3e0] sm:$0xff]  ;;  %v233_v32 = vld [vmem:[%s1692_s1 + $0x358] sm:$0xff] }
  0x22   :  { %414 = vmatpush.msra.mxu1 %v145_v48  ;;  %434 = vmatpush.msra.mxu2 %v161_v49  ;;  %v249_v33 = vld [vmem:[%s1692_s1 + $0x3d8] sm:$0xff]  ;;  %v200_v34 = vld [vmem:[%s1692_s1 + $0x250] sm:$0xff]  ;;  %v199_v39 = vld [vmem:[%s1692_s1 + $0x248] sm:$0xff] }
  0x23   :  { %454 = vmatpush.msra.mxu3 %v177_v50  ;;  %395 = vmatpush.msra.mxu0 %v128_v51  ;;  %v216_v36 = vld [vmem:[%s1692_s1 + $0x2d0] sm:$0xff]  ;;  %v215_v40 = vld [vmem:[%s1692_s1 + $0x2c8] sm:$0xff]  ;;  %v198_v43 = vld [vmem:[%s1692_s1 + $0x240] sm:$0xff] }
  0x24   :  { %415 = vmatpush.msra.mxu1 %v144_v52  ;;  %435 = vmatpush.msra.mxu2 %v160_v53  ;;  %v232_v37 = vld [vmem:[%s1692_s1 + $0x350] sm:$0xff]  ;;  %v231_v41 = vld [vmem:[%s1692_s1 + $0x348] sm:$0xff]  ;;  %v214_v44 = vld [vmem:[%s1692_s1 + $0x2c0] sm:$0xff] }
  0x25   :  { %455 = vmatpush.msra.mxu3 %v176_v54  ;;  %396 = vmatpush.msra.mxu0 %v127_v55  ;;  %v248_v38 = vld [vmem:[%s1692_s1 + $0x3d0] sm:$0xff]  ;;  %v247_v42 = vld [vmem:[%s1692_s1 + $0x3c8] sm:$0xff]  ;;  %v230_v45 = vld [vmem:[%s1692_s1 + $0x340] sm:$0xff] }
  0x26   :  { %416 = vmatpush.msra.mxu1 %v143_v56  ;;  %436 = vmatpush.msra.mxu2 %v159_v57  ;;  %v246_v46 = vld [vmem:[%s1692_s1 + $0x3c0] sm:$0xff]  ;;  %v197_v47 = vld [vmem:[%s1692_s1 + $0x238] sm:$0xff]  ;;  %v196_v51 = vld [vmem:[%s1692_s1 + $0x230] sm:$0xff] }
  0x27   :  { %456 = vmatpush.msra.mxu3 %v175_v58  ;;  %397 = vmatpush.msra.mxu0 %v126_v59  ;;  %v213_v48 = vld [vmem:[%s1692_s1 + $0x2b8] sm:$0xff]  ;;  %v212_v52 = vld [vmem:[%s1692_s1 + $0x2b0] sm:$0xff]  ;;  %v195_v55 = vld [vmem:[%s1692_s1 + $0x228] sm:$0xff] }
  0x28   :  { %417 = vmatpush.msra.mxu1 %v142_v60  ;;  %437 = vmatpush.msra.mxu2 %v158_v61  ;;  %v229_v49 = vld [vmem:[%s1692_s1 + $0x338] sm:$0xff]  ;;  %v228_v53 = vld [vmem:[%s1692_s1 + $0x330] sm:$0xff]  ;;  %v211_v56 = vld [vmem:[%s1692_s1 + $0x2a8] sm:$0xff] }
  0x29   :  { %457 = vmatpush.msra.mxu3 %v174_v62  ;;  %462 = vmatpush.msrb.mxu0 %v205_v63  ;;  %v245_v50 = vld [vmem:[%s1692_s1 + $0x3b8] sm:$0xff]  ;;  %v244_v54 = vld [vmem:[%s1692_s1 + $0x3b0] sm:$0xff]  ;;  %v227_v57 = vld [vmem:[%s1692_s1 + $0x328] sm:$0xff] }
  0x2a   :  { %482 = vmatpush.msrb.mxu1 %v221_v0  ;;  %502 = vmatpush.msrb.mxu2 %v237_v1  ;;  %v243_v58 = vld [vmem:[%s1692_s1 + $0x3a8] sm:$0xff]  ;;  %v194_v59 = vld [vmem:[%s1692_s1 + $0x220] sm:$0xff]  ;;  %v193_v63 = vld [vmem:[%s1692_s1 + $0x218] sm:$0xff] }
  0x2b   :  { %522 = vmatpush.msrb.mxu3 %v253_v2  ;;  %463 = vmatpush.msrb.mxu0 %v204_v3  ;;  %v210_v60 = vld [vmem:[%s1692_s1 + $0x2a0] sm:$0xff]  ;;  %v209_v0 = vld [vmem:[%s1692_s1 + $0x298] sm:$0xff]  ;;  %v192_v3 = vld [vmem:[%s1692_s1 + $0x210] sm:$0xff] }
  0x2c   :  { %483 = vmatpush.msrb.mxu1 %v220_v4  ;;  %503 = vmatpush.msrb.mxu2 %v236_v5  ;;  %v226_v61 = vld [vmem:[%s1692_s1 + $0x320] sm:$0xff]  ;;  %v225_v1 = vld [vmem:[%s1692_s1 + $0x318] sm:$0xff]  ;;  %v208_v4 = vld [vmem:[%s1692_s1 + $0x290] sm:$0xff] }
  0x2d   :  { %523 = vmatpush.msrb.mxu3 %v252_v9  ;;  %464 = vmatpush.msrb.mxu0 %v203_v10  ;;  %v242_v62 = vld [vmem:[%s1692_s1 + $0x3a0] sm:$0xff]  ;;  %v241_v2 = vld [vmem:[%s1692_s1 + $0x398] sm:$0xff]  ;;  %v224_v5 = vld [vmem:[%s1692_s1 + $0x310] sm:$0xff] }
  0x2e   :  { %484 = vmatpush.msrb.mxu1 %v219_v11  ;;  %504 = vmatpush.msrb.mxu2 %v235_v15  ;;  %v240_v9 = vld [vmem:[%s1692_s1 + $0x390] sm:$0xff]  ;;  %v191_v10 = vld [vmem:[%s1692_s1 + $0x208] sm:$0xff] }
  0x2f   :  { %524 = vmatpush.msrb.mxu3 %v251_v16  ;;  %465 = vmatpush.msrb.mxu0 %v202_v17  ;;  %v207_v11 = vld [vmem:[%s1692_s1 + $0x288] sm:$0xff]  ;;  %v190_v17 = vld [vmem:[%s1692_s1 + $0x200] sm:$0xff] }
  0x30   :  { %485 = vmatpush.msrb.mxu1 %v218_v21  ;;  %505 = vmatpush.msrb.mxu2 %v234_v22  ;;  %v223_v15 = vld [vmem:[%s1692_s1 + $0x308] sm:$0xff]  ;;  %v206_v21 = vld [vmem:[%s1692_s1 + $0x280] sm:$0xff] }
  0x31   :  { %525 = vmatpush.msrb.mxu3 %v250_v23  ;;  %466 = vmatpush.msrb.mxu0 %v201_v27  ;;  %v239_v16 = vld [vmem:[%s1692_s1 + $0x388] sm:$0xff]  ;;  %v222_v22 = vld [vmem:[%s1692_s1 + $0x300] sm:$0xff] }
  0x32   :  { %486 = vmatpush.msrb.mxu1 %v217_v28  ;;  %506 = vmatpush.msrb.mxu2 %v233_v32  ;;  %v238_v23 = vld [vmem:[%s1692_s1 + $0x380] sm:$0xff] }
  0x33   :  { %526 = vmatpush.msrb.mxu3 %v249_v33  ;;  %467 = vmatpush.msrb.mxu0 %v200_v34 }
  0x34   :  { %487 = vmatpush.msrb.mxu1 %v216_v36  ;;  %507 = vmatpush.msrb.mxu2 %v232_v37 }
  0x35   :  { %527 = vmatpush.msrb.mxu3 %v248_v38  ;;  %468 = vmatpush.msrb.mxu0 %v199_v39 }
  0x36   :  { %488 = vmatpush.msrb.mxu1 %v215_v40  ;;  %508 = vmatpush.msrb.mxu2 %v231_v41  ;;  %v269_v41 = vld [vmem:[%s1692_s1 + $0x478] sm:$0xff] }
  0x37   :  { %528 = vmatpush.msrb.mxu3 %v247_v42  ;;  %469 = vmatpush.msrb.mxu0 %v198_v43  ;;  %v285_v43 = vld [vmem:[%s1692_s1 + $0x4f8] sm:$0xff] }
  0x38   :  { %489 = vmatpush.msrb.mxu1 %v214_v44  ;;  %509 = vmatpush.msrb.mxu2 %v230_v45  ;;  %v301_v44 = vld [vmem:[%s1692_s1 + $0x578] sm:$0xff] }
  0x39   :  { %529 = vmatpush.msrb.mxu3 %v246_v46  ;;  %470 = vmatpush.msrb.mxu0 %v197_v47  ;;  %v317_v47 = vld [vmem:[%s1692_s1 + $0x5f8] sm:$0xff] }
  0x3a   :  { %490 = vmatpush.msrb.mxu1 %v213_v48  ;;  %510 = vmatpush.msrb.mxu2 %v229_v49  ;;  %v268_v48 = vld [vmem:[%s1692_s1 + $0x470] sm:$0xff] }
  0x3b   :  { %530 = vmatpush.msrb.mxu3 %v245_v50  ;;  %471 = vmatpush.msrb.mxu0 %v196_v51  ;;  %v300_v51 = vld [vmem:[%s1692_s1 + $0x570] sm:$0xff] }
  0x3c   :  { %491 = vmatpush.msrb.mxu1 %v212_v52  ;;  %511 = vmatpush.msrb.mxu2 %v228_v53 }
  0x3d   :  { %531 = vmatpush.msrb.mxu3 %v244_v54  ;;  %472 = vmatpush.msrb.mxu0 %v195_v55  ;;  %v316_v54 = vld [vmem:[%s1692_s1 + $0x5f0] sm:$0xff]  ;;  %v267_v55 = vld [vmem:[%s1692_s1 + $0x468] sm:$0xff] }
  0x3e   :  { %492 = vmatpush.msrb.mxu1 %v211_v56  ;;  %512 = vmatpush.msrb.mxu2 %v227_v57  ;;  %v283_v56 = vld [vmem:[%s1692_s1 + $0x4e8] sm:$0xff] }
  0x3f   :  { %532 = vmatpush.msrb.mxu3 %v243_v58  ;;  %473 = vmatpush.msrb.mxu0 %v194_v59 }
  0x40   :  { %493 = vmatpush.msrb.mxu1 %v210_v60  ;;  %513 = vmatpush.msrb.mxu2 %v226_v61  ;;  %v315_v60 = vld [vmem:[%s1692_s1 + $0x5e8] sm:$0xff]  ;;  %v266_v61 = vld [vmem:[%s1692_s1 + $0x460] sm:$0xff] }
  0x41   :  { %533 = vmatpush.msrb.mxu3 %v242_v62  ;;  %474 = vmatpush.msrb.mxu0 %v193_v63  ;;  %v298_v63 = vld [vmem:[%s1692_s1 + $0x560] sm:$0xff] }
  0x42   :  { %494 = vmatpush.msrb.mxu1 %v209_v0  ;;  %514 = vmatpush.msrb.mxu2 %v225_v1 }
  0x43   :  { %534 = vmatpush.msrb.mxu3 %v241_v2  ;;  %475 = vmatpush.msrb.mxu0 %v192_v3  ;;  %v314_v2 = vld [vmem:[%s1692_s1 + $0x5e0] sm:$0xff] }
  0x44   :  { %495 = vmatpush.msrb.mxu1 %v208_v4  ;;  %515 = vmatpush.msrb.mxu2 %v224_v5 }
  0x45   :  { %535 = vmatpush.msrb.mxu3 %v240_v9  ;;  %476 = vmatpush.msrb.mxu0 %v191_v10 }
  0x46   :  { %496 = vmatpush.msrb.mxu1 %v207_v11  ;;  %516 = vmatpush.msrb.mxu2 %v223_v15  ;;  %v281_v15 = vld [vmem:[%s1692_s1 + $0x4d8] sm:$0xff] }
  0x47   :  { %536 = vmatpush.msrb.mxu3 %v239_v16  ;;  %477 = vmatpush.msrb.mxu0 %v190_v17 }
  0x48   :  { %497 = vmatpush.msrb.mxu1 %v206_v21  ;;  %517 = vmatpush.msrb.mxu2 %v222_v22  ;;  %v313_v22 = vld [vmem:[%s1692_s1 + $0x5d8] sm:$0xff] }
  0x49   :  { %537 = vmatpush.msrb.mxu3 %v238_v23  ;;  %v264_v23 = vld [vmem:[%s1692_s1 + $0x450] sm:$0xff] }
  0x85   :  { %v1238_v27 = vpop.xlane.xlu0 %58 }
  0x86   :  { %v60_v28 = vsub.f32 %v776_v6, %v1238_v27  ;;  %v61_v32 = vsub.f32 %v778_v7, %v1238_v27  ;;  %v62_v33 = vsub.f32 %v780_v8, %v1238_v27  ;;  %v63_v34 = vsub.f32 %v791_v12, %v1238_v27 }
  0x87   :  { %v64_v40 = vsub.f32 %v793_v13, %v1238_v27  ;;  %v65_v6 = vsub.f32 %v795_v14, %v1238_v27  ;;  %v66_v8 = vsub.f32 %v806_v18, %v1238_v27  ;;  %v67_v12 = vsub.f32 %v808_v19, %v1238_v27 }
  0x88   :  { %v76_v36 = vmul.f32 1.442695, %v60_v28  ;;  %v78_v37 = vmul.f32 1.442695, %v61_v32  ;;  %v80_v38 = vmul.f32 1.442695, %v62_v33  ;;  %v68_v19 = vsub.f32 %v810_v20, %v1238_v27 }
  0x89   :  { %v82_v39 = vmul.f32 1.442695, %v63_v34  ;;  %v84_v7 = vmul.f32 1.442695, %v64_v40  ;;  %v86_v42 = vmul.f32 1.442695, %v65_v6  ;;  %v69_v52 = vsub.f32 %v821_v24, %v1238_v27 }
  0x8a   :  { %709 = vpow2.f32 %v76_v36  ;;  %v88_v18 = vmul.f32 1.442695, %v66_v8  ;;  %v90_v49 = vmul.f32 1.442695, %v67_v12  ;;  %v284_v20 = vld [vmem:[%s1692_s1 + $0x4f0] sm:$0xff]  ;;  %v299_v24 = vld [vmem:[%s1692_s1 + $0x568] sm:$0xff]  ;;  %v70_v57 = vsub.f32 %v823_v25, %v1238_v27 }
  0x8b   :  { %711 = vpow2.f32 %v78_v37  ;;  %v92_v58 = vmul.f32 1.442695, %v68_v19  ;;  %v282_v25 = vld [vmem:[%s1692_s1 + $0x4e0] sm:$0xff]  ;;  %v71_v0 = vsub.f32 %v825_v26, %v1238_v27  ;;  %v94_v1 = vmul.f32 1.442695, %v69_v52  ;;  %v265_v26 = vld [vmem:[%s1692_s1 + $0x458] sm:$0xff] }
  0x8c   :  { %713 = vpow2.f32 %v80_v38  ;;  %v72_v5 = vsub.f32 %v832_v29, %v1238_v27  ;;  %v96_v9 = vmul.f32 1.442695, %v70_v57  ;;  %v297_v29 = vld [vmem:[%s1692_s1 + $0x558] sm:$0xff]  ;;  %v73_v16 = vsub.f32 %v834_v30, %v1238_v27  ;;  %v280_v30 = vld [vmem:[%s1692_s1 + $0x4d0] sm:$0xff]  ;;  %v263_v36 = vld [vmem:[%s1692_s1 + $0x448] sm:$0xff] }
  0x8d   :  { %715 = vpow2.f32 %v82_v39  ;;  %v98_v17 = vmul.f32 1.442695, %v71_v0  ;;  %v296_v32 = vld [vmem:[%s1692_s1 + $0x550] sm:$0xff]  ;;  %v74_v37 = vsub.f32 %v836_v31, %v1238_v27  ;;  %v279_v40 = vld [vmem:[%s1692_s1 + $0x4c8] sm:$0xff]  ;;  %v262_v8 = vld [vmem:[%s1692_s1 + $0x440] sm:$0xff] }
  0x8e   :  { %717 = vpow2.f32 %v84_v7  ;;  %v100_v33 = vmul.f32 1.442695, %v72_v5  ;;  %v312_v34 = vld [vmem:[%s1692_s1 + $0x5d0] sm:$0xff]  ;;  %v295_v6 = vld [vmem:[%s1692_s1 + $0x548] sm:$0xff]  ;;  %v102_v7 = vmul.f32 1.442695, %v73_v16 }
  0x8f   :  { %719 = vpow2.f32 %v86_v42  ;;  %v311_v31 = vld [vmem:[%s1692_s1 + $0x5c8] sm:$0xff]  ;;  %v278_v42 = vld [vmem:[%s1692_s1 + $0x4c0] sm:$0xff]  ;;  %v256_v5 = vld [vmem:[%s1692_s1 + $0x410] sm:$0xff] }
  0x90   :  { %v710_v13 = vpop.eup %709  ;;  %721 = vpow2.f32 %v88_v18  ;;  %v104_v18 = vmul.f32 1.442695, %v74_v37  ;;  %v259_v52 = vld [vmem:[%s1692_s1 + $0x428] sm:$0xff]  ;;  %v381_v37 = vld [vmem:[%s1692_s1 + $0x7f8] sm:$0xff] }
  0x91   :  { %v712_v14 = vpop.eup %711  ;;  %398 = vmatmul.f32.vlgmr.msra.gmra.mxu0 %v710_v13  ;;  %723 = vpow2.f32 %v90_v49  ;;  %v307_v57 = vld [vmem:[%s1692_s1 + $0x5a8] sm:$0xff] }
  0x92   :  { %v714_v45 = vpop.eup %713  ;;  %v108_v46 = vadd.f32 %v712_v14, %v710_v13  ;;  %418 = vmatmul.f32.vlgmr.msra.gmra.mxu1 %v712_v14  ;;  %542 = vmatpush.msra.mxu0 %v269_v41  ;;  %725 = vpow2.f32 %v92_v58  ;;  %v294_v13 = vld [vmem:[%s1692_s1 + $0x540] sm:$0xff]  ;;  %v261_v14 = vld [vmem:[%s1692_s1 + $0x438] sm:$0xff]  ;;  %v287_v16 = vld [vmem:[%s1692_s1 + $0x508] sm:$0xff] }
  0x93   :  { %v716_v50 = vpop.eup %715  ;;  %438 = vmatmul.f32.vlgmr.msra.gmra.mxu2 %v714_v45  ;;  %562 = vmatpush.msra.mxu1 %v285_v43  ;;  %727 = vpow2.f32 %v94_v1  ;;  %v310_v43 = vld [vmem:[%s1692_s1 + $0x5c0] sm:$0xff]  ;;  %v273_v1 = vld [vmem:[%s1692_s1 + $0x498] sm:$0xff] }
  0x94   :  { %v109_v53 = vadd.f32 %v714_v45, %v108_v46  ;;  %458 = vmatmul.f32.vlgmr.msra.gmra.mxu3 %v716_v50  ;;  %582 = vmatpush.msra.mxu2 %v301_v44  ;;  %v718_v62 = vpop.eup %717  ;;  %729 = vpow2.f32 %v96_v9  ;;  %v75_v44 = vsub.f32 %v846_v35, %v1238_v27  ;;  %v277_v46 = vld [vmem:[%s1692_s1 + $0x4b8] sm:$0xff]  ;;  %v260_v27 = vld [vmem:[%s1692_s1 + $0x430] sm:$0xff]  ;;  %v258_v58 = vld [vmem:[%s1692_s1 + $0x420] sm:$0xff] }
  0x95   :  { %602 = vmatpush.msra.mxu3 %v317_v47  ;;  %543 = vmatpush.msra.mxu0 %v268_v48  ;;  %v720_v4 = vpop.eup %719  ;;  %731 = vpow2.f32 %v98_v17  ;;  %v293_v47 = vld [vmem:[%s1692_s1 + $0x538] sm:$0xff]  ;;  %v272_v9 = vld [vmem:[%s1692_s1 + $0x490] sm:$0xff] }
  0x96   :  { %v110_v59 = vadd.f32 %v716_v50, %v109_v53  ;;  %563 = vmatpush.msra.mxu1 %v284_v20  ;;  %583 = vmatpush.msra.mxu2 %v300_v51  ;;  %v722_v11 = vpop.eup %721  ;;  %733 = vpow2.f32 %v100_v33  ;;  %v309_v35 = vld [vmem:[%s1692_s1 + $0x5b8] sm:$0xff]  ;;  %v276_v50 = vld [vmem:[%s1692_s1 + $0x4b0] sm:$0xff]  ;;  %v106_v53 = vmul.f32 1.442695, %v75_v44 }
  0x97   :  { %603 = vmatpush.msra.mxu3 %v316_v54  ;;  %544 = vmatpush.msra.mxu0 %v267_v55  ;;  %v724_v21 = vpop.eup %723  ;;  %735 = vpow2.f32 %v102_v7  ;;  %v292_v20 = vld [vmem:[%s1692_s1 + $0x530] sm:$0xff]  ;;  %v333_v33 = vld [vmem:[%s1692_s1 + $0x678] sm:$0xff]  ;;  %v331_v7 = vld [vmem:[%s1692_s1 + $0x668] sm:$0xff] }
  0x98   :  { %564 = vmatpush.msra.mxu1 %v283_v56  ;;  %584 = vmatpush.msra.mxu2 %v299_v24  ;;  %v111_v3 = vadd.f32 %v718_v62, %v110_v59  ;;  %v1345_v39 = vpop.eup %725  ;;  %v308_v51 = vld [vmem:[%s1692_s1 + $0x5b0] sm:$0xff]  ;;  %737 = vpow2.f32 %v104_v18  ;;  %v275_v56 = vld [vmem:[%s1692_s1 + $0x4a8] sm:$0xff]  ;;  %v345_v44 = vld [vmem:[%s1692_s1 + $0x6d8] sm:$0xff] }
  0x99   :  { %604 = vmatpush.msra.mxu3 %v315_v60  ;;  %545 = vmatpush.msra.mxu0 %v266_v61  ;;  %v1360_v41 = vpop.eup %727  ;;  %v291_v24 = vld [vmem:[%s1692_s1 + $0x528] sm:$0xff]  ;;  %v274_v61 = vld [vmem:[%s1692_s1 + $0x4a0] sm:$0xff]  ;;  %739 = vpow2.f32 %v106_v53  ;;  %v361_v18 = vld [vmem:[%s1692_s1 + $0x758] sm:$0xff] }
  0x9a   :  { %565 = vmatpush.msra.mxu1 %v282_v25  ;;  %585 = vmatpush.msra.mxu2 %v298_v63  ;;  %v112_v10 = vadd.f32 %v720_v4, %v111_v3  ;;  %v1377_v45 = vpop.eup %729  ;;  %v306_v25 = vld [vmem:[%s1692_s1 + $0x5a0] sm:$0xff]  ;;  %v257_v63 = vld [vmem:[%s1692_s1 + $0x418] sm:$0xff] }
  0x9b   :  { %605 = vmatpush.msra.mxu3 %v314_v2  ;;  %478 = vmatmul.f32.vlgmr.msrb.gmra.mxu0 %v718_v62  ;;  %v1392_v49 = vpop.eup %731  ;;  %v290_v62 = vld [vmem:[%s1692_s1 + $0x520] sm:$0xff]  ;;  %v289_v2 = vld [vmem:[%s1692_s1 + $0x518] sm:$0xff] }
  0x9c   :  { %498 = vmatmul.f32.vlgmr.msrb.gmra.mxu1 %v720_v4  ;;  %518 = vmatmul.f32.vlgmr.msrb.gmra.mxu2 %v722_v11  ;;  %v113_v28 = vadd.f32 %v722_v11, %v112_v10  ;;  %v1407_v55 = vpop.eup %733  ;;  %v305_v4 = vld [vmem:[%s1692_s1 + $0x598] sm:$0xff]  ;;  %v304_v11 = vld [vmem:[%s1692_s1 + $0x590] sm:$0xff]  ;;  %v374_v53 = vld [vmem:[%s1692_s1 + $0x7c0] sm:$0xff] }
  0x9d   :  { %538 = vmatmul.f32.vlgmr.msrb.gmra.mxu3 %v724_v21  ;;  %546 = vmatpush.msra.mxu0 %v265_v26  ;;  %v1422_v60 = vpop.eup %735  ;;  %v288_v26 = vld [vmem:[%s1692_s1 + $0x510] sm:$0xff] }
  0x9e   :  { %566 = vmatpush.msra.mxu1 %v281_v15  ;;  %586 = vmatpush.msra.mxu2 %v297_v29  ;;  %v114_v38 = vadd.f32 %v724_v21, %v113_v28  ;;  %v1443_v3 = vpop.eup %737  ;;  %v255_v15 = vld [vmem:[%s1692_s1 + $0x408] sm:$0xff]  ;;  %v286_v28 = vld [vmem:[%s1692_s1 + $0x500] sm:$0xff] }
  0x9f   :  { %606 = vmatpush.msra.mxu3 %v313_v22  ;;  %547 = vmatpush.msra.mxu0 %v264_v23  ;;  %v271_v29 = vld [vmem:[%s1692_s1 + $0x488] sm:$0xff]  ;;  %v1470_v17 = vpop.eup %739  ;;  %v254_v22 = vld [vmem:[%s1692_s1 + $0x400] sm:$0xff] }
  0xa0   :  { %567 = vmatpush.msra.mxu1 %v280_v30  ;;  %587 = vmatpush.msra.mxu2 %v296_v32  ;;  %v115_v12 = vadd.f32 %v1345_v39, %v114_v38  ;;  %v303_v21 = vld [vmem:[%s1692_s1 + $0x588] sm:$0xff]  ;;  %v270_v23 = vld [vmem:[%s1692_s1 + $0x480] sm:$0xff]  ;;  %v332_v38 = vld [vmem:[%s1692_s1 + $0x670] sm:$0xff] }
  0xa1   :  { %607 = vmatpush.msra.mxu3 %v312_v34  ;;  %548 = vmatpush.msra.mxu0 %v263_v36  ;;  %v302_v32 = vld [vmem:[%s1692_s1 + $0x580] sm:$0xff]  ;;  %v349_v34 = vld [vmem:[%s1692_s1 + $0x6f8] sm:$0xff] }
  0xa2   :  { %568 = vmatpush.msra.mxu1 %v279_v40  ;;  %588 = vmatpush.msra.mxu2 %v295_v6  ;;  %v116_v19 = vadd.f32 %v1360_v41, %v115_v12  ;;  %v365_v36 = vld [vmem:[%s1692_s1 + $0x778] sm:$0xff]  ;;  %v364_v40 = vld [vmem:[%s1692_s1 + $0x770] sm:$0xff]  ;;  %v379_v12 = vld [vmem:[%s1692_s1 + $0x7e8] sm:$0xff] }
  0xa3   :  { %608 = vmatpush.msra.mxu3 %v311_v31  ;;  %549 = vmatpush.msra.mxu0 %v262_v8  ;;  %v380_v6 = vld [vmem:[%s1692_s1 + $0x7f0] sm:$0xff]  ;;  %v347_v31 = vld [vmem:[%s1692_s1 + $0x6e8] sm:$0xff] }
  0xa4   :  { %569 = vmatpush.msra.mxu1 %v278_v42  ;;  %589 = vmatpush.msra.mxu2 %v294_v13  ;;  %v117_v48 = vadd.f32 %v1377_v45, %v116_v19  ;;  %v363_v8 = vld [vmem:[%s1692_s1 + $0x768] sm:$0xff]  ;;  %v346_v42 = vld [vmem:[%s1692_s1 + $0x6e0] sm:$0xff]  ;;  %v377_v19 = vld [vmem:[%s1692_s1 + $0x7d8] sm:$0xff] }
  0xa5   :  { %609 = vmatpush.msra.mxu3 %v310_v43  ;;  %550 = vmatpush.msra.mxu0 %v261_v14  ;;  %v362_v13 = vld [vmem:[%s1692_s1 + $0x760] sm:$0xff]  ;;  %v329_v14 = vld [vmem:[%s1692_s1 + $0x658] sm:$0xff] }
  0xa6   :  { %570 = vmatpush.msra.mxu1 %v277_v46  ;;  %590 = vmatpush.msra.mxu2 %v293_v47  ;;  %v118_v54 = vadd.f32 %v1392_v49, %v117_v48  ;;  %v378_v43 = vld [vmem:[%s1692_s1 + $0x7e0] sm:$0xff]  ;;  %v344_v46 = vld [vmem:[%s1692_s1 + $0x6d0] sm:$0xff]  ;;  %v343_v48 = vld [vmem:[%s1692_s1 + $0x6c8] sm:$0xff] }
  0xa7   :  { %610 = vmatpush.msra.mxu3 %v309_v35  ;;  %551 = vmatpush.msra.mxu0 %v260_v27  ;;  %v360_v47 = vld [vmem:[%s1692_s1 + $0x750] sm:$0xff]  ;;  %v327_v27 = vld [vmem:[%s1692_s1 + $0x648] sm:$0xff] }
  0xa8   :  { %571 = vmatpush.msra.mxu1 %v276_v50  ;;  %591 = vmatpush.msra.mxu2 %v292_v20  ;;  %v119_v59 = vadd.f32 %v1407_v55, %v118_v54  ;;  %v376_v35 = vld [vmem:[%s1692_s1 + $0x7d0] sm:$0xff]  ;;  %v375_v50 = vld [vmem:[%s1692_s1 + $0x7c8] sm:$0xff]  ;;  %v326_v20 = vld [vmem:[%s1692_s1 + $0x640] sm:$0xff] }
  0xa9   :  { %611 = vmatpush.msra.mxu3 %v308_v51  ;;  %552 = vmatpush.msra.mxu0 %v259_v52  ;;  %v342_v51 = vld [vmem:[%s1692_s1 + $0x6c0] sm:$0xff]  ;;  %v325_v54 = vld [vmem:[%s1692_s1 + $0x638] sm:$0xff] }
  0xaa   :  { %572 = vmatpush.msra.mxu1 %v275_v56  ;;  %592 = vmatpush.msra.mxu2 %v291_v24  ;;  %v120_v0 = vadd.f32 %v1422_v60, %v119_v59  ;;  %v358_v52 = vld [vmem:[%s1692_s1 + $0x740] sm:$0xff]  ;;  %v341_v56 = vld [vmem:[%s1692_s1 + $0x6b8] sm:$0xff]  ;;  %v340_v59 = vld [vmem:[%s1692_s1 + $0x6b0] sm:$0xff] }
  0xab   :  { %612 = vmatpush.msra.mxu3 %v307_v57  ;;  %553 = vmatpush.msra.mxu0 %v258_v58  ;;  %v357_v24 = vld [vmem:[%s1692_s1 + $0x738] sm:$0xff]  ;;  %v324_v58 = vld [vmem:[%s1692_s1 + $0x630] sm:$0xff] }
  0xac   :  { %573 = vmatpush.msra.mxu1 %v274_v61  ;;  %593 = vmatpush.msra.mxu2 %v290_v62  ;;  %v121_v10 = vadd.f32 %v1443_v3, %v120_v0  ;;  %v373_v57 = vld [vmem:[%s1692_s1 + $0x7b8] sm:$0xff]  ;;  %v356_v61 = vld [vmem:[%s1692_s1 + $0x730] sm:$0xff]  ;;  %v355_v0 = vld [vmem:[%s1692_s1 + $0x728] sm:$0xff] }
  0xad   :  { %613 = vmatpush.msra.mxu3 %v306_v25  ;;  %554 = vmatpush.msra.mxu0 %v257_v63  ;;  %v372_v62 = vld [vmem:[%s1692_s1 + $0x7b0] sm:$0xff]  ;;  %v323_v25 = vld [vmem:[%s1692_s1 + $0x628] sm:$0xff] }
  0xae   :  { %574 = vmatpush.msra.mxu1 %v273_v1  ;;  %594 = vmatpush.msra.mxu2 %v289_v2  ;;  %v122_v30 = vadd.f32 %v1470_v17, %v121_v10  ;;  %v339_v63 = vld [vmem:[%s1692_s1 + $0x6a8] sm:$0xff]  ;;  %v322_v2 = vld [vmem:[%s1692_s1 + $0x620] sm:$0xff]  ;;  %v337_v10 = vld [vmem:[%s1692_s1 + $0x698] sm:$0xff] }
  0xaf   :  { %614 = vmatpush.msra.mxu3 %v305_v4  ;;  %555 = vmatpush.msra.mxu0 %v256_v5  ;;  %v371_v1 = vld [vmem:[%s1692_s1 + $0x7a8] sm:$0xff]  ;;  %v338_v4 = vld [vmem:[%s1692_s1 + $0x6a0] sm:$0xff] }
  0xb0   :  { %575 = vmatpush.msra.mxu1 %v272_v9  ;;  %595 = vmatpush.msra.mxu2 %v288_v26  ;;  %v354_v5 = vld [vmem:[%s1692_s1 + $0x720] sm:$0xff]  ;;  %v321_v26 = vld [vmem:[%s1692_s1 + $0x618] sm:$0xff] }
  0xb1   :  { %615 = vmatpush.msra.mxu3 %v304_v11  ;;  %556 = vmatpush.msra.mxu0 %v255_v15  ;;  %v370_v9 = vld [vmem:[%s1692_s1 + $0x7a0] sm:$0xff]  ;;  %v353_v11 = vld [vmem:[%s1692_s1 + $0x718] sm:$0xff] }
  0xb2   :  { %576 = vmatpush.msra.mxu1 %v271_v29  ;;  %596 = vmatpush.msra.mxu2 %v287_v16  ;;  %v369_v15 = vld [vmem:[%s1692_s1 + $0x798] sm:$0xff]  ;;  %v320_v29 = vld [vmem:[%s1692_s1 + $0x610] sm:$0xff] }
  0xb3   :  { %616 = vmatpush.msra.mxu3 %v303_v21  ;;  %557 = vmatpush.msra.mxu0 %v254_v22  ;;  %v336_v16 = vld [vmem:[%s1692_s1 + $0x690] sm:$0xff] }
  0xb4   :  { %577 = vmatpush.msra.mxu1 %v270_v23  ;;  %597 = vmatpush.msra.mxu2 %v286_v28  ;;  %v352_v21 = vld [vmem:[%s1692_s1 + $0x710] sm:$0xff]  ;;  %v319_v23 = vld [vmem:[%s1692_s1 + $0x608] sm:$0xff] }
  0xb5   :  { %617 = vmatpush.msra.mxu3 %v302_v32  ;;  %123 = vadd.xlane.f32.xlu0 %v122_v30  ;;  %v368_v22 = vld [vmem:[%s1692_s1 + $0x790] sm:$0xff]  ;;  %v335_v28 = vld [vmem:[%s1692_s1 + $0x688] sm:$0xff] }
  0xb6   :  { %558 = vmatmul.f32.vlgmr.msra.gmra.mxu0 %v1345_v39  ;;  %578 = vmatmul.f32.vlgmr.msra.gmra.mxu1 %v1360_v41  ;;  %v348_v39 = vld [vmem:[%s1692_s1 + $0x6f0] sm:$0xff]  ;;  %v330_v41 = vld [vmem:[%s1692_s1 + $0x660] sm:$0xff]  ;;  %v351_v30 = vld [vmem:[%s1692_s1 + $0x708] sm:$0xff] }
  0xb7   :  { %598 = vmatmul.f32.vlgmr.msra.gmra.mxu2 %v1377_v45  ;;  %618 = vmatmul.f32.vlgmr.msra.gmra.mxu3 %v1392_v49  ;;  %v328_v45 = vld [vmem:[%s1692_s1 + $0x650] sm:$0xff]  ;;  %v359_v49 = vld [vmem:[%s1692_s1 + $0x748] sm:$0xff] }
  0xb8   :  { %622 = vmatpush.msrb.mxu0 %v333_v33  ;;  %642 = vmatpush.msrb.mxu1 %v349_v34  ;;  %v367_v32 = vld [vmem:[%s1692_s1 + $0x788] sm:$0xff]  ;;  %v318_v33 = vld [vmem:[%s1692_s1 + $0x600] sm:$0xff] }
  0xb9   :  { %662 = vmatpush.msrb.mxu2 %v365_v36  ;;  %682 = vmatpush.msrb.mxu3 %v381_v37  ;;  %v334_v34 = vld [vmem:[%s1692_s1 + $0x680] sm:$0xff] }
  0xba   :  { %623 = vmatpush.msrb.mxu0 %v332_v38  ;;  %643 = vmatpush.msrb.mxu1 %v348_v39  ;;  %v350_v36 = vld [vmem:[%s1692_s1 + $0x700] sm:$0xff] }
  0xbb   :  { %663 = vmatpush.msrb.mxu2 %v364_v40  ;;  %683 = vmatpush.msrb.mxu3 %v380_v6  ;;  %v366_v37 = vld [vmem:[%s1692_s1 + $0x780] sm:$0xff] }
  0xbc   :  { %624 = vmatpush.msrb.mxu0 %v331_v7  ;;  %644 = vmatpush.msrb.mxu1 %v347_v31 }
  0xbd   :  { %664 = vmatpush.msrb.mxu2 %v363_v8  ;;  %684 = vmatpush.msrb.mxu3 %v379_v12 }
  0xbe   :  { %625 = vmatpush.msrb.mxu0 %v330_v41  ;;  %645 = vmatpush.msrb.mxu1 %v346_v42 }
  0xbf   :  { %665 = vmatpush.msrb.mxu2 %v362_v13  ;;  %685 = vmatpush.msrb.mxu3 %v378_v43 }
  0xc0   :  { %626 = vmatpush.msrb.mxu0 %v329_v14  ;;  %646 = vmatpush.msrb.mxu1 %v345_v44 }
  0xc1   :  { %666 = vmatpush.msrb.mxu2 %v361_v18  ;;  %686 = vmatpush.msrb.mxu3 %v377_v19 }
  0xc2   :  { %627 = vmatpush.msrb.mxu0 %v328_v45  ;;  %647 = vmatpush.msrb.mxu1 %v344_v46 }
  0xc3   :  { %667 = vmatpush.msrb.mxu2 %v360_v47  ;;  %687 = vmatpush.msrb.mxu3 %v376_v35 }
  0xc4   :  { %628 = vmatpush.msrb.mxu0 %v327_v27  ;;  %648 = vmatpush.msrb.mxu1 %v343_v48 }
  0xc5   :  { %668 = vmatpush.msrb.mxu2 %v359_v49  ;;  %688 = vmatpush.msrb.mxu3 %v375_v50 }
  0xc6   :  { %629 = vmatpush.msrb.mxu0 %v326_v20  ;;  %649 = vmatpush.msrb.mxu1 %v342_v51 }
  0xc7   :  { %669 = vmatpush.msrb.mxu2 %v358_v52  ;;  %689 = vmatpush.msrb.mxu3 %v374_v53 }
  0xc8   :  { %630 = vmatpush.msrb.mxu0 %v325_v54  ;;  %650 = vmatpush.msrb.mxu1 %v341_v56 }
  0xc9   :  { %670 = vmatpush.msrb.mxu2 %v357_v24  ;;  %690 = vmatpush.msrb.mxu3 %v373_v57 }
  0xca   :  { %631 = vmatpush.msrb.mxu0 %v324_v58  ;;  %651 = vmatpush.msrb.mxu1 %v340_v59 }
  0xcb   :  { %671 = vmatpush.msrb.mxu2 %v356_v61  ;;  %691 = vmatpush.msrb.mxu3 %v372_v62 }
  0xcc   :  { %632 = vmatpush.msrb.mxu0 %v323_v25  ;;  %652 = vmatpush.msrb.mxu1 %v339_v63 }
  0xcd   :  { %672 = vmatpush.msrb.mxu2 %v355_v0  ;;  %692 = vmatpush.msrb.mxu3 %v371_v1 }
  0xce   :  { %633 = vmatpush.msrb.mxu0 %v322_v2  ;;  %653 = vmatpush.msrb.mxu1 %v338_v4 }
  0xcf   :  { %673 = vmatpush.msrb.mxu2 %v354_v5  ;;  %693 = vmatpush.msrb.mxu3 %v370_v9 }
  0xd0   :  { %634 = vmatpush.msrb.mxu0 %v321_v26  ;;  %654 = vmatpush.msrb.mxu1 %v337_v10 }
  0xd1   :  { %674 = vmatpush.msrb.mxu2 %v353_v11  ;;  %694 = vmatpush.msrb.mxu3 %v369_v15 }
  0xd2   :  { %635 = vmatpush.msrb.mxu0 %v320_v29  ;;  %655 = vmatpush.msrb.mxu1 %v336_v16 }
  0xd3   :  { %675 = vmatpush.msrb.mxu2 %v352_v21  ;;  %695 = vmatpush.msrb.mxu3 %v368_v22 }
  0xd4   :  { %636 = vmatpush.msrb.mxu0 %v319_v23  ;;  %656 = vmatpush.msrb.mxu1 %v335_v28 }
  0xd5   :  { %676 = vmatpush.msrb.mxu2 %v351_v30  ;;  %696 = vmatpush.msrb.mxu3 %v367_v32 }
  0xd6   :  { %637 = vmatpush.msrb.mxu0 %v318_v33  ;;  %657 = vmatpush.msrb.mxu1 %v334_v34 }
  0xd7   :  { %677 = vmatpush.msrb.mxu2 %v350_v36  ;;  %697 = vmatpush.msrb.mxu3 %v366_v37 }
  0xd8   :  { %638 = vmatmul.f32.vlgmr.msrb.gmra.mxu0 %v1407_v55  ;;  %658 = vmatmul.f32.vlgmr.msrb.gmra.mxu1 %v1422_v60 }
  0xd9   :  { %678 = vmatmul.f32.vlgmr.msrb.gmra.mxu2 %v1443_v3  ;;  %698 = vmatmul.f32.vlgmr.msrb.gmra.mxu3 %v1470_v17 }
 0x10e   :  { %v399_v38 = vpop.f32.mrf.mxu0 }
 0x10f   :  { %v419_v39 = vpop.f32.mrf.mxu1 }
 0x110   :  { %v420_v6 = vadd.f32 %v419_v39, %v399_v38 }
 0x116   :  { %v439_v40 = vpop.f32.mrf.mxu2 }
 0x117   :  { %v440_v7 = vadd.f32 %v439_v40, %v420_v6  ;;  %v459_v31 = vpop.f32.mrf.mxu3 }
 0x118   :  { %v479_v12 = vpop.f32.mrf.mxu0 }
 0x119   :  { %v460_v8 = vadd.f32 %v459_v31, %v440_v7  ;;  %v499_v42 = vpop.f32.mrf.mxu1 }
 0x11b   :  { %v480_v41 = vadd.f32 %v479_v12, %v460_v8 }
 0x11d   :  { %v500_v13 = vadd.f32 %v499_v42, %v480_v41 }
 0x11f   :  { %v519_v43 = vpop.f32.mrf.mxu2 }
 0x120   :  { %v520_v14 = vadd.f32 %v519_v43, %v500_v13  ;;  %v539_v55 = vpop.f32.mrf.mxu3 }
 0x122   :  { %v540_v60 = vadd.f32 %v539_v55, %v520_v14 }
 0x128   :  { %v124_v27 = vpop.xlane.xlu0 %123 }
 0x129   :  { %741 = vrcp.f32 %v124_v27 }
 0x12f   :  { %v742_v54 = vpop.eup %741 }
 0x133   :  { %v559_v44 = vpop.f32.mrf.mxu0  ;;  %v579_v3 = vpop.f32.mrf.mxu1 }
 0x134   :  { %v560_v18 = vadd.f32 %v559_v44, %v540_v60 }
 0x136   :  { %v580_v17 = vadd.f32 %v579_v3, %v560_v18 }
 0x13a   :  { %v599_v19 = vpop.f32.mrf.mxu2  ;;  %v619_v46 = vpop.f32.mrf.mxu3 }
 0x13b   :  { %v600_v45 = vadd.f32 %v599_v19, %v580_v17 }
 0x13d   :  { %v620_v47 = vadd.f32 %v619_v46, %v600_v45 }
 0x155   :  { %v639_v35 = vpop.f32.mrf.mxu0  ;;  %v659_v49 = vpop.f32.mrf.mxu1 }
 0x156   :  { %v640_v48 = vadd.f32 %v639_v35, %v620_v47 }
 0x158   :  { %v660_v50 = vadd.f32 %v659_v49, %v640_v48 }
 0x15c   :  { %v679_v20 = vpop.f32.mrf.mxu2  ;;  %v699_v52 = vpop.f32.mrf.mxu3 }
 0x15d   :  { %v680_v51 = vadd.f32 %v679_v20, %v660_v50 }
 0x15f   :  { %v700_v53 = vadd.f32 %v699_v52, %v680_v51 }
 0x161   :  { %v702_v56 = vmul.f32 %v742_v54, %v700_v53 }
 0x163   :  { %704 = vst.msk [vmem:[%s1693_s2] sm:$0xff] %vm703_vm0, %v702_v56 }

</bundles_post_ra>
